<compile_context>
chip_gen: v7x
topology: tpu7x:2x2x1
jax: 0.10.0
libtpu: 0.0.40
codegen_flags: <defaults>
</compile_context>

<pallas_src>
import jax
import jax.numpy as jnp
from jax.experimental import pallas as pl
from jax.experimental.pallas import tpu as pltpu


def _add_kernel(a_ref, b_ref, o_ref):
    o_ref[...] = a_ref[...] + b_ref[...]


# Tiled-path parameters.
#   512 rows x 1024 lanes x 4 B = 2 MiB per operand per block
#   -> 3 operands x 2 pipeline buffers = 12 MiB < 16 MiB (v5e scoped default),
#      << 32 MiB (v6e/v7x scoped default).  Lane axis is a multiple of 128 so
#      stores stay unmasked on all generations.
_LANE_COLS = 1024
_TILE_ROWS = 512
# Tensors at/above this many bytes per operand use the tiled "parallel" grid
# (>= 2 steps), so v7x's second TensorCore is not left idle for mid sizes.
_TILED_THRESHOLD_BYTES = 1 << 20  # 1 MiB


def pallas_add(x, y, *, tile_rows=_TILE_ROWS, lane_cols=_LANE_COLS,
               tiled_threshold_bytes=_TILED_THRESHOLD_BYTES):
    assert x.shape == y.shape and x.dtype == y.dtype
    orig_shape = x.shape
    total = int(x.size)
    itemsize = jnp.dtype(x.dtype).itemsize
    nbytes = total * itemsize
    # Pure streaming op: `total` adds, 2 reads + 1 write of the full tensor.
    cost = pl.CostEstimate(flops=total, transcendentals=0,
                           bytes_accessed=3 * nbytes)

    # ---- Large/mid-tensor path: lane-dense (rows, lane_cols) slab, 1-D grid -
    if nbytes >= tiled_threshold_bytes:
        flat_x = x.reshape(-1)
        flat_y = y.reshape(-1)
        pad = (-total) % lane_cols
        if pad:  # robust for awkward sizes: never a giant single VMEM block
            flat_x = jnp.pad(flat_x, (0, pad))
            flat_y = jnp.pad(flat_y, (0, pad))
        rows = (total + pad) // lane_cols
        # Shrink the tile if needed so the "parallel" grid has >= 2 steps
        # (lets v7x shard the stream across both TensorCores), but never grow
        # it beyond the VMEM-safe tile_rows.  Keep sublane (8) alignment.
        eff_tile = min(tile_rows, pl.cdiv(rows, 2))
        eff_tile = max(8, (eff_tile // 8) * 8)
        a2 = flat_x.reshape(rows, lane_cols)
        b2 = flat_y.reshape(rows, lane_cols)
        out2 = pl.pallas_call(
            _add_kernel,
            out_shape=jax.ShapeDtypeStruct((rows, lane_cols), x.dtype),
            grid=(pl.cdiv(rows, eff_tile),),
            in_specs=[
                pl.BlockSpec((eff_tile, lane_cols), lambda i: (i, 0)),
                pl.BlockSpec((eff_tile, lane_cols), lambda i: (i, 0)),
            ],
            out_specs=pl.BlockSpec((eff_tile, lane_cols), lambda i: (i, 0)),
            compiler_params=pltpu.CompilerParams(
                dimension_semantics=("parallel",)),
            cost_estimate=cost,
        )(a2, b2)
        out_flat = out2.reshape(-1)
        if pad:
            out_flat = out_flat[:total]
        return out_flat.reshape(orig_shape)

    # ---- Small-tensor path (this module): single lane-dense full block ------
    # (8, total//8) slab: all 8 sublanes used, long lane axis.  A tensor below
    # the 1 MiB threshold gives at most ~3 MiB of VMEM for the single block.
    flat_x = x.reshape(-1)
    flat_y = y.reshape(-1)
    pad = (-total) % 8  # avoid the rows=1 (1/8 sublane utilization) fallback
    if pad:
        flat_x = jnp.pad(flat_x, (0, pad))
        flat_y = jnp.pad(flat_y, (0, pad))
    rows = 8
    cols = (total + pad) // rows          # e.g. (8, 4312) for 1x176x14x14
    a2 = flat_x.reshape(rows, cols)
    b2 = flat_y.reshape(rows, cols)
    out2 = pl.pallas_call(
        _add_kernel,
        out_shape=jax.ShapeDtypeStruct((rows, cols), x.dtype),
        in_specs=[
            pl.BlockSpec((rows, cols), lambda: (0, 0)),
            pl.BlockSpec((rows, cols), lambda: (0, 0)),
        ],
        out_specs=pl.BlockSpec((rows, cols), lambda: (0, 0)),
        cost_estimate=cost,
    )(a2, b2)
    out_flat = out2.reshape(-1)
    if pad:
        out_flat = out_flat[:total]
    return out_flat.reshape(orig_shape)


if __name__ == "__main__":
    key = jax.random.PRNGKey(0)
    k1, k2, k3, k4 = jax.random.split(key, 4)

    # Shapes consistent with the module's forward: [1, 176, 14, 14] f32.
    x415 = jax.random.normal(k1, (1, 176, 14, 14), dtype=jnp.float32)
    x400 = jax.random.normal(k2, (1, 176, 14, 14), dtype=jnp.float32)
    ref = x415 + x400

    # Small-tensor path (the module's real size).
    out = pallas_add(x415, x400)
    jax.block_until_ready(out)
    assert out.shape == (1, 176, 14, 14)
    assert jnp.allclose(out, ref, atol=1e-6, rtol=1e-6)

    # Exercise the tiled (parallel-grid) path + lane_cols padding fallback on
    # the same small shape by lowering the activation threshold.
    out_tiled = pallas_add(x415, x400, tiled_threshold_bytes=0)
    jax.block_until_ready(out_tiled)
    assert jnp.allclose(out_tiled, ref, atol=1e-6, rtol=1e-6)

    # Exercise the sublane-padding fallback (total not a multiple of 8).
    a_odd = jax.random.normal(k3, (1, 3, 5, 7), dtype=jnp.float32)
    b_odd = jax.random.normal(k4, (1, 3, 5, 7), dtype=jnp.float32)
    out_odd = pallas_add(a_odd, b_odd)
    jax.block_until_ready(out_odd)
    assert jnp.allclose(out_odd, a_odd + b_odd, atol=1e-6, rtol=1e-6)

    print("KERNEL_OK")
</pallas_src>

<mosaic_0001>
module attributes {stable_mosaic.version = 11 : i64} {
  func.func @_add_kernel(%arg0: memref<8x4312xf32, #tpu.memory_space<vmem>>, %arg1: memref<8x4312xf32, #tpu.memory_space<vmem>>, %arg2: memref<8x4312xf32, #tpu.memory_space<vmem>>) attributes {dimension_semantics = [], scalar_prefetch = 0 : i64, scratch_operands = 0 : i64, tpu.core_type = #tpu.core_type<tc>} {
    %c0 = arith.constant 0 : index
    %c0_0 = arith.constant 0 : index
    %0 = vector.load %arg0[%c0, %c0_0] : memref<8x4312xf32, #tpu.memory_space<vmem>>, vector<8x4312xf32>
    %c0_1 = arith.constant 0 : index
    %c0_2 = arith.constant 0 : index
    %1 = vector.load %arg1[%c0_1, %c0_2] : memref<8x4312xf32, #tpu.memory_space<vmem>>, vector<8x4312xf32>
    %2 = arith.addf %0, %1 : vector<8x4312xf32>
    %c0_3 = arith.constant 0 : index
    %c0_4 = arith.constant 0 : index
    %3 = vector.load %arg2[%c0_3, %c0_4] : memref<8x4312xf32, #tpu.memory_space<vmem>>, vector<8x4312xf32>
    tpu.vector_store %arg2[%c0_3, %c0_4], %2 {strides = array<i32>} : memref<8x4312xf32, #tpu.memory_space<vmem>>, vector<8x4312xf32>,
    return
  }
}

</mosaic_0001>

<bundles_post_ra>
// kernel: tpu_custom_call.1
= control target key start
LH: loop header
LB: loop body
LE: loop exit
PB: predicated region body
PF: predicated region fallthrough
CT: control target
= control target key end

     0   :  { %7 = vsyncpa [#allocation3], 0  ;;  %s318_s0 = inlined_call_operand.hbm [shape: f32[8,4312], index: 0, kind: input, shape index: {}]   ;;  %s319_s1 = inlined_call_operand.hbm [shape: f32[8,4312], index: 1, kind: input, shape index: {}]   ;;  %s320_s2 = inlined_call_operand.hbm [shape: f32[8,4312], index: 2, kind: output, shape index: {}]  }
   0x1   :  { %8 = vsyncpa [#allocation6], 0 }
   0x2   :  { %9 = vsyncpa [#allocation4], 0  ;;  %s264_s9 = smov [#allocation2]   ;;  %s265_s11 = smov [#allocation5]  }
   0x3   :  { %s16_s10 = sshll.u32 %s264_s9, 4  ;;  %s26_s12 = sshll.u32 %s265_s11, 4  ;;  %s17_s10 = int_to_ptr.vmem [resolvable:$true] %s16_s10  ;;  %s27_s12 = int_to_ptr.vmem [resolvable:$true] %s26_s12 }
   0x4   :  { %s192_s15 = scalar_lea.hbm %s318_s0, 4352 }
   0x5   :  { %p193_p0 = scmp.ne.s32.totalorder %s318_s0, %s192_s15  ;;  %p196_p1 = scmp.lt.u32.totalorder %s192_s15, %s318_s0 }
   0x7   :  { %p198_p2 = pnand %p196_p1, %p193_p0 }
   0x9   :  { %201 = shalt.err (!%p198_p2)
}
   0xa   :  { %s202_s20 = scalar_lea.vmem %s17_s10, 4352  ;;  %p207_p4 = scmp.lt.s32.totalorder %s17_s10, %s17_s10 }
   0xb   :  { %p203_p3 = scmp.ne.s32.totalorder %s17_s10, %s202_s20  ;;  %p208_p5 = scmp.lt.s32.totalorder %s202_s20, %s202_s20 }
   0xd   :  { %p209_p6 = por %p208_p5, %p207_p4 }
   0xf   :  { %p210_p7 = pnand %p209_p6, %p203_p3 }
  0x11   :  { %213 = shalt.err (!%p210_p7)
}
  0x12   :  { %19 = dma.hbm_to_vmem [thread:$0]  %s318_s0, 4352, %s17_s10, [#allocation3]  }
  0x13   :  { %s214_s25 = scalar_lea.hbm %s319_s1, 4352 }
  0x14   :  { %p215_p8 = scmp.ne.s32.totalorder %s319_s1, %s214_s25  ;;  %p218_p9 = scmp.lt.u32.totalorder %s214_s25, %s319_s1 }
  0x16   :  { %p220_p10 = pnand %p218_p9, %p215_p8 }
  0x18   :  { %223 = shalt.err (!%p220_p10)
}
  0x19   :  { %s224_s30 = scalar_lea.vmem %s27_s12, 4352  ;;  %p229_p12 = scmp.lt.s32.totalorder %s27_s12, %s27_s12 }
  0x1a   :  { %p225_p11 = scmp.ne.s32.totalorder %s27_s12, %s224_s30  ;;  %p230_p13 = scmp.lt.s32.totalorder %s224_s30, %s224_s30 }
  0x1c   :  { %p231_p0 = por %p230_p13, %p229_p12 }
  0x1e   :  { %p232_p1 = pnand %p231_p0, %p225_p11 }
  0x20   :  { %235 = shalt.err (!%p232_p1)
}
  0x21   :  { %29 = dma.hbm_to_vmem [thread:$0]  %s319_s1, 4352, %s27_s12, [#allocation6]  }
  0x22   :  { %258 = dma.done.wait [#allocation3], 4352  }
  0x23   :  { %259 = vsyncadd [#allocation3], 4294962944 }
  0x24   :  { %260 = dma.done.wait [#allocation6], 4352  }
  0x25   :  { %261 = vsyncadd [#allocation6], 4294962944  ;;  %v36_v0 = vld [vmem:[#allocation2] sm:$0xff]  ;;  %v70_v1 = vld [vmem:[#allocation5] sm:$0xff]  ;;  %s266_s1 = smov [#allocation7]   ;;  %vm171_vm0 = vcmask 719872  }
  0x26   :  { %v37_v2 = vld [vmem:[#allocation2 + $0x8] sm:$0xff]  ;;  %v104_v3 = vadd.f32 %v70_v1, %v36_v0  ;;  %v71_v4 = vld [vmem:[#allocation5 + $0x8] sm:$0xff]  ;;  %v38_v5 = vld [vmem:[#allocation2 + $0x10] sm:$0xff]  ;;  %s179_s4 = sshll.u32 %s266_s1, 4  ;;  %s180_s4 = int_to_ptr.vmem [resolvable:$true] %s179_s4 }
  0x27   :  { %v72_v6 = vld [vmem:[#allocation5 + $0x10] sm:$0xff]  ;;  %v105_v7 = vadd.f32 %v71_v4, %v37_v2  ;;  %v39_v9 = vld [vmem:[#allocation2 + $0x18] sm:$0xff]  ;;  %v73_v10 = vld [vmem:[#allocation5 + $0x18] sm:$0xff]  ;;  %s236_s5 = scalar_lea.vmem %s180_s4, 4352  ;;  %p241_p3 = scmp.lt.s32.totalorder %s180_s4, %s180_s4 }
  0x28   :  { %v106_v8 = vadd.f32 %v72_v6, %v38_v5  ;;  %v40_v11 = vld [vmem:[#allocation2 + $0x20] sm:$0xff]  ;;  %138 = vst [vmem:[#allocation7] sm:$0xff] %v104_v3  ;;  %v107_v12 = vadd.f32 %v73_v10, %v39_v9  ;;  %v74_v13 = vld [vmem:[#allocation5 + $0x20] sm:$0xff]  ;;  %v41_v14 = vld [vmem:[#allocation2 + $0x28] sm:$0xff]  ;;  %p237_p2 = scmp.ne.s32.totalorder %s180_s4, %s236_s5  ;;  %p242_p4 = scmp.lt.s32.totalorder %s236_s5, %s236_s5 }
  0x29   :  { %v75_v15 = vld [vmem:[#allocation5 + $0x28] sm:$0xff]  ;;  %139 = vst [vmem:[#allocation7 + $0x8] sm:$0xff] %v105_v7  ;;  %v108_v16 = vadd.f32 %v74_v13, %v40_v11  ;;  %v42_v18 = vld [vmem:[#allocation2 + $0x30] sm:$0xff]  ;;  %v76_v19 = vld [vmem:[#allocation5 + $0x30] sm:$0xff] }
  0x2a   :  { %140 = vst [vmem:[#allocation7 + $0x10] sm:$0xff] %v106_v8  ;;  %v109_v17 = vadd.f32 %v75_v15, %v41_v14  ;;  %v43_v20 = vld [vmem:[#allocation2 + $0x38] sm:$0xff]  ;;  %141 = vst [vmem:[#allocation7 + $0x18] sm:$0xff] %v107_v12  ;;  %v110_v21 = vadd.f32 %v76_v19, %v42_v18  ;;  %v77_v22 = vld [vmem:[#allocation5 + $0x38] sm:$0xff]  ;;  %p243_p5 = por %p242_p4, %p241_p3 }
  0x2b   :  { %v44_v23 = vld [vmem:[#allocation2 + $0x40] sm:$0xff]  ;;  %v78_v24 = vld [vmem:[#allocation5 + $0x40] sm:$0xff]  ;;  %142 = vst [vmem:[#allocation7 + $0x20] sm:$0xff] %v108_v16  ;;  %v111_v25 = vadd.f32 %v77_v22, %v43_v20  ;;  %v45_v27 = vld [vmem:[#allocation2 + $0x48] sm:$0xff] }
  0x2c   :  { %143 = vst [vmem:[#allocation7 + $0x28] sm:$0xff] %v109_v17  ;;  %v112_v26 = vadd.f32 %v78_v24, %v44_v23  ;;  %v79_v28 = vld [vmem:[#allocation5 + $0x48] sm:$0xff]  ;;  %v46_v29 = vld [vmem:[#allocation2 + $0x50] sm:$0xff]  ;;  %144 = vst [vmem:[#allocation7 + $0x30] sm:$0xff] %v110_v21  ;;  %p244_p6 = pnand %p243_p5, %p237_p2 }
  0x2d   :  { %v113_v30 = vadd.f32 %v79_v28, %v45_v27  ;;  %v80_v31 = vld [vmem:[#allocation5 + $0x50] sm:$0xff]  ;;  %v47_v32 = vld [vmem:[#allocation2 + $0x58] sm:$0xff]  ;;  %v81_v33 = vld [vmem:[#allocation5 + $0x58] sm:$0xff]  ;;  %145 = vst [vmem:[#allocation7 + $0x38] sm:$0xff] %v111_v25 }
  0x2e   :  { %146 = vst [vmem:[#allocation7 + $0x40] sm:$0xff] %v112_v26  ;;  %v114_v34 = vadd.f32 %v80_v31, %v46_v29  ;;  %v115_v35 = vadd.f32 %v81_v33, %v47_v32  ;;  %v48_v36 = vld [vmem:[#allocation2 + $0x60] sm:$0xff]  ;;  %v82_v37 = vld [vmem:[#allocation5 + $0x60] sm:$0xff]  ;;  %v49_v38 = vld [vmem:[#allocation2 + $0x68] sm:$0xff] }
  0x2f   :  { %147 = vst [vmem:[#allocation7 + $0x48] sm:$0xff] %v113_v30  ;;  %v116_v39 = vadd.f32 %v82_v37, %v48_v36  ;;  %v83_v40 = vld [vmem:[#allocation5 + $0x68] sm:$0xff]  ;;  %v50_v41 = vld [vmem:[#allocation2 + $0x70] sm:$0xff]  ;;  %v84_v42 = vld [vmem:[#allocation5 + $0x70] sm:$0xff] }
  0x30   :  { %148 = vst [vmem:[#allocation7 + $0x50] sm:$0xff] %v114_v34  ;;  %149 = vst [vmem:[#allocation7 + $0x58] sm:$0xff] %v115_v35  ;;  %v117_v43 = vadd.f32 %v83_v40, %v49_v38  ;;  %v118_v44 = vadd.f32 %v84_v42, %v50_v41  ;;  %v51_v45 = vld [vmem:[#allocation2 + $0x78] sm:$0xff]  ;;  %v85_v46 = vld [vmem:[#allocation5 + $0x78] sm:$0xff] }
  0x31   :  { %v52_v47 = vld [vmem:[#allocation2 + $0x80] sm:$0xff]  ;;  %150 = vst [vmem:[#allocation7 + $0x60] sm:$0xff] %v116_v39  ;;  %v119_v48 = vadd.f32 %v85_v46, %v51_v45  ;;  %v86_v49 = vld [vmem:[#allocation5 + $0x80] sm:$0xff]  ;;  %v53_v50 = vld [vmem:[#allocation2 + $0x88] sm:$0xff] }
  0x32   :  { %v87_v51 = vld [vmem:[#allocation5 + $0x88] sm:$0xff]  ;;  %151 = vst [vmem:[#allocation7 + $0x68] sm:$0xff] %v117_v43  ;;  %152 = vst [vmem:[#allocation7 + $0x70] sm:$0xff] %v118_v44  ;;  %v120_v52 = vadd.f32 %v86_v49, %v52_v47  ;;  %v54_v54 = vld [vmem:[#allocation2 + $0x90] sm:$0xff] }
  0x33   :  { %v121_v53 = vadd.f32 %v87_v51, %v53_v50  ;;  %v88_v55 = vld [vmem:[#allocation5 + $0x90] sm:$0xff]  ;;  %v55_v56 = vld [vmem:[#allocation2 + $0x98] sm:$0xff]  ;;  %153 = vst [vmem:[#allocation7 + $0x78] sm:$0xff] %v119_v48  ;;  %v89_v58 = vld [vmem:[#allocation5 + $0x98] sm:$0xff] }
  0x34   :  { %v122_v57 = vadd.f32 %v88_v55, %v54_v54  ;;  %v56_v59 = vld [vmem:[#allocation2 + $0xa0] sm:$0xff]  ;;  %v90_v60 = vld [vmem:[#allocation5 + $0xa0] sm:$0xff]  ;;  %154 = vst [vmem:[#allocation7 + $0x80] sm:$0xff] %v120_v52  ;;  %v123_v61 = vadd.f32 %v89_v58, %v55_v56  ;;  %v57_v63 = vld [vmem:[#allocation2 + $0xa8] sm:$0xff] }
  0x35   :  { %155 = vst [vmem:[#allocation7 + $0x88] sm:$0xff] %v121_v53  ;;  %v124_v62 = vadd.f32 %v90_v60, %v56_v59  ;;  %v91_v0 = vld [vmem:[#allocation5 + $0xa8] sm:$0xff]  ;;  %v58_v1 = vld [vmem:[#allocation2 + $0xb0] sm:$0xff]  ;;  %v92_v3 = vld [vmem:[#allocation5 + $0xb0] sm:$0xff] }
  0x36   :  { %156 = vst [vmem:[#allocation7 + $0x90] sm:$0xff] %v122_v57  ;;  %v125_v2 = vadd.f32 %v91_v0, %v57_v63  ;;  %v59_v4 = vld [vmem:[#allocation2 + $0xb8] sm:$0xff]  ;;  %v93_v5 = vld [vmem:[#allocation5 + $0xb8] sm:$0xff]  ;;  %157 = vst [vmem:[#allocation7 + $0x98] sm:$0xff] %v123_v61  ;;  %v126_v6 = vadd.f32 %v92_v3, %v58_v1 }
  0x37   :  { %158 = vst [vmem:[#allocation7 + $0xa0] sm:$0xff] %v124_v62  ;;  %v127_v7 = vadd.f32 %v93_v5, %v59_v4  ;;  %v60_v8 = vld [vmem:[#allocation2 + $0xc0] sm:$0xff]  ;;  %v94_v9 = vld [vmem:[#allocation5 + $0xc0] sm:$0xff]  ;;  %v61_v10 = vld [vmem:[#allocation2 + $0xc8] sm:$0xff] }
  0x38   :  { %159 = vst [vmem:[#allocation7 + $0xa8] sm:$0xff] %v125_v2  ;;  %v128_v11 = vadd.f32 %v94_v9, %v60_v8  ;;  %v95_v12 = vld [vmem:[#allocation5 + $0xc8] sm:$0xff]  ;;  %v62_v13 = vld [vmem:[#allocation2 + $0xd0] sm:$0xff]  ;;  %v96_v14 = vld [vmem:[#allocation5 + $0xd0] sm:$0xff] }
  0x39   :  { %160 = vst [vmem:[#allocation7 + $0xb0] sm:$0xff] %v126_v6  ;;  %161 = vst [vmem:[#allocation7 + $0xb8] sm:$0xff] %v127_v7  ;;  %v129_v15 = vadd.f32 %v95_v12, %v61_v10  ;;  %v130_v16 = vadd.f32 %v96_v14, %v62_v13  ;;  %v63_v17 = vld [vmem:[#allocation2 + $0xd8] sm:$0xff]  ;;  %v97_v18 = vld [vmem:[#allocation5 + $0xd8] sm:$0xff] }
  0x3a   :  { %v64_v19 = vld [vmem:[#allocation2 + $0xe0] sm:$0xff]  ;;  %162 = vst [vmem:[#allocation7 + $0xc0] sm:$0xff] %v128_v11  ;;  %v131_v20 = vadd.f32 %v97_v18, %v63_v17  ;;  %v98_v21 = vld [vmem:[#allocation5 + $0xe0] sm:$0xff]  ;;  %v65_v22 = vld [vmem:[#allocation2 + $0xe8] sm:$0xff] }
  0x3b   :  { %v99_v23 = vld [vmem:[#allocation5 + $0xe8] sm:$0xff]  ;;  %163 = vst [vmem:[#allocation7 + $0xc8] sm:$0xff] %v129_v15  ;;  %164 = vst [vmem:[#allocation7 + $0xd0] sm:$0xff] %v130_v16  ;;  %v132_v24 = vadd.f32 %v98_v21, %v64_v19  ;;  %v66_v26 = vld [vmem:[#allocation2 + $0xf0] sm:$0xff] }
  0x3c   :  { %v133_v25 = vadd.f32 %v99_v23, %v65_v22  ;;  %v100_v27 = vld [vmem:[#allocation5 + $0xf0] sm:$0xff]  ;;  %v67_v28 = vld [vmem:[#allocation2 + $0xf8] sm:$0xff]  ;;  %165 = vst [vmem:[#allocation7 + $0xd8] sm:$0xff] %v131_v20  ;;  %v101_v30 = vld [vmem:[#allocation5 + $0xf8] sm:$0xff] }
  0x3d   :  { %v134_v29 = vadd.f32 %v100_v27, %v66_v26  ;;  %v68_v31 = vld [vmem:[#allocation2 + $0x100] sm:$0xff]  ;;  %v102_v32 = vld [vmem:[#allocation5 + $0x100] sm:$0xff]  ;;  %166 = vst [vmem:[#allocation7 + $0xe0] sm:$0xff] %v132_v24  ;;  %v135_v33 = vadd.f32 %v101_v30, %v67_v28  ;;  %v69_v35 = vld [vmem:[#allocation2 + $0x108] sm:$0xff] }
  0x3e   :  { %167 = vst [vmem:[#allocation7 + $0xe8] sm:$0xff] %v133_v25  ;;  %v136_v34 = vadd.f32 %v102_v32, %v68_v31  ;;  %v103_v36 = vld [vmem:[#allocation5 + $0x108] sm:$0xff] }
  0x3f   :  { %168 = vst [vmem:[#allocation7 + $0xf0] sm:$0xff] %v134_v29  ;;  %v137_v37 = vadd.f32 %v103_v36, %v69_v35  ;;  %169 = vst [vmem:[#allocation7 + $0xf8] sm:$0xff] %v135_v33 }
  0x40   :  { %170 = vst [vmem:[#allocation7 + $0x100] sm:$0xff] %v136_v34 }
  0x41   :  { %172 = vst.msk [vmem:[#allocation7 + $0x108] sm:$0xff] %vm171_vm0, %v137_v37 }
  0x42   :  { %247 = shalt.err (!%p244_p6)
}
  0x43   :  { %s248_s8 = scalar_lea.hbm %s320_s2, 4352 }
  0x44   :  { %p249_p7 = scmp.ne.s32.totalorder %s320_s2, %s248_s8  ;;  %p252_p8 = scmp.lt.u32.totalorder %s248_s8, %s320_s2 }
  0x46   :  { %p254_p9 = pnand %p252_p8, %p249_p7 }
  0x48   :  { %257 = shalt.err (!%p254_p9)
}
  0x49   :  { %182 = dma.vmem_to_hbm [thread:$0]  %s180_s4, 4352, %s320_s2, [#allocation4]  }
  0x4a   :  { %262 = dma.done.wait [#allocation4], 4352  }
  0x4b   :  { %263 = vsyncadd [#allocation4], 4294962944 }
  0x4c   :  { %186 = vsyncpa [#allocation3], 1 }
  0x4d   :  { %187 = vsyncpa [#allocation6], 1 }
  0x4e   :  { %188 = vsyncpa [#allocation4], 1 }

</bundles_post_ra>
